<compile_context>
chip_gen: v7x
topology: tpu7x:2x2x1
jax: 0.10.0
libtpu: 0.0.40
codegen_flags: <defaults>
</compile_context>

<pallas_src>
import jax
import jax.numpy as jnp
from jax.experimental import pallas as pl
from jax.experimental.pallas import tpu as pltpu


# ---------------------------------------------------------------------------
# Fused kernel: FeatureExtractor + Classifier on the raw .view(-1, 64) flatten.
# Each grid step handles TB batch elements.
# ---------------------------------------------------------------------------
def _cnn_kernel(xp_ref, w1c_ref, b1_ref, w2c_ref, b2_ref,
                w1blk_ref, cb1_ref, w2blk_ref, cb2_ref, w3blk_ref, cb3_ref,
                feat_ref, cls_ref, sp1_ref, sp2_ref, sp3_ref):
    f32 = jnp.float32
    TB, Lp2, Cin = xp_ref.shape
    L = Lp2 - 2
    L1 = (L - 1) // 2 + 1              # MaxPool1d(3, 2, 1) output length
    L2 = (L1 - 1) // 2 + 1
    C1, C2 = 32, 64

    def write_padded(pad_ref, x):
        # pad_ref: (TB, Lin+2, C) scratch; holds [0-row, x, 0-row] each program.
        Lin, C = x.shape[1], x.shape[2]
        pad_ref[:, 0:1, :] = jnp.zeros((TB, 1, C), f32)
        pad_ref[:, Lin + 1:Lin + 2, :] = jnp.zeros((TB, 1, C), f32)
        pad_ref[:, 1:Lin + 1, :] = x

    def maxpool3s2p1(pad_ref, Lout):
        # out[:, j, :] = max(pad[:, 2j, :], pad[:, 2j+1, :], pad[:, 2j+2, :]).
        # Zero padding is equivalent to MaxPool1d's -inf padding here because the
        # pooled tensors are post-ReLU (>= 0).
        a = pad_ref[:, pl.ds(0, Lout, stride=2), :]
        b = pad_ref[:, pl.ds(1, Lout, stride=2), :]
        c = pad_ref[:, pl.ds(2, Lout, stride=2), :]
        return jnp.maximum(jnp.maximum(a, b), c)

    # ---- conv1 (im2col -> one MXU matmul over TB*L rows) + ReLU -------------
    xp = xp_ref[...]                                            # (TB, L+2, Cin) pre-padded
    col1 = jnp.concatenate(
        [xp[:, 0:L, :], xp[:, 1:L + 1, :], xp[:, 2:L + 2, :]], axis=2)
    h1 = jnp.dot(col1.reshape(TB * L, 3 * Cin), w1c_ref[...],
                 preferred_element_type=f32) + b1_ref[...]
    h1 = jnp.maximum(h1, 0.0).reshape(TB, L, C1)

    # ---- pool1 ----------------------------------------------------------------
    write_padded(sp1_ref, h1)
    p1 = maxpool3s2p1(sp1_ref, L1)                              # (TB, L1, 32)

    # ---- conv2 (zero pad via VMEM scratch, im2col -> one matmul) + ReLU ------
    write_padded(sp2_ref, p1)
    col2 = jnp.concatenate(
        [sp2_ref[:, 0:L1, :], sp2_ref[:, 1:L1 + 1, :], sp2_ref[:, 2:L1 + 2, :]],
        axis=2)                                                 # (TB, L1, 96)
    h2 = jnp.dot(col2.reshape(TB * L1, 3 * C1), w2c_ref[...],
                 preferred_element_type=f32) + b2_ref[...]
    h2 = jnp.maximum(h2, 0.0).reshape(TB, L1, C2)

    # ---- pool2 ----------------------------------------------------------------
    write_padded(sp3_ref, h2)
    p2 = maxpool3s2p1(sp3_ref, L2)                              # (TB, L2, 64)  (NLC)
    feat_ref[...] = p2

    # ---- classifier head ("big-row" block-diagonal weights, fused) ----------
    # Row n = b*L2 + r of PyTorch's feature.view(-1, 64) appears as columns
    # [r*W, (r+1)*W) of batch element b's single output row; the NCL-flatten
    # permutation is baked into w1blk by the wrapper, so no in-kernel
    # transpose/reshape of the feature map is needed.
    q1 = w1blk_ref.shape[2]                                     # L2*32
    acc = jnp.zeros((TB, q1), f32)
    for l in range(L2):                                         # static, small
        acc = acc + jnp.dot(p2[:, l, :], w1blk_ref[l],
                            preferred_element_type=f32)
    h = jnp.maximum(acc + cb1_ref[...], 0.0)
    h = jnp.maximum(jnp.dot(h, w2blk_ref[...], preferred_element_type=f32)
                    + cb2_ref[...], 0.0)
    cls_ref[...] = (jnp.dot(h, w3blk_ref[...], preferred_element_type=f32)
                    + cb3_ref[...])                             # (TB, >=128) lane-dense


# ---------------------------------------------------------------------------
# Wrapper-side weight preparation
# ---------------------------------------------------------------------------
def _prep_weights(p, L2):
    f32 = jnp.float32
    # Conv weights (Co, Ci, 3) -> im2col layout (3*Ci, Co): Wcol[k*Ci+ci, co] = W[co, ci, k].
    w1c = jnp.transpose(p["conv1_w"].astype(f32), (2, 1, 0)).reshape(3 * 20, 32)
    w2c = jnp.transpose(p["conv2_w"].astype(f32), (2, 1, 0)).reshape(3 * 32, 64)
    b1 = p["conv1_b"].astype(f32).reshape(1, 32)
    b2 = p["conv2_b"].astype(f32).reshape(1, 64)

    # Classifier in "big-row" block-diagonal form.  Per batch element the NCL
    # feature (64, L2) flattens (PyTorch .view(-1, 64)) into L2 rows of 64; flat
    # element m = c*L2 + l feeds fc1 input index (m - 64*r) of row r = m // 64
    # only.  Hence w1blk[l, c, r*32+o] = fc1_w[o, m-64r] inside row r's window,
    # 0 elsewhere; layers 2/3 are plain block-diagonal repeats.
    W1 = p["fc1_w"].astype(f32).T                      # (64, 32)
    W2 = p["fc2_w"].astype(f32).T                      # (32, 16)
    W3 = p["fc3_w"].astype(f32).T                      # (16, classnum)
    classnum = W3.shape[1]
    m = jnp.arange(64 * L2)
    rblk = jax.nn.one_hot(m // 64, L2, dtype=f32)                      # (64*L2, L2)
    w1big = (rblk[:, :, None] * W1[m % 64][:, None, :]).reshape(64 * L2, L2 * 32)
    w1blk = w1big.reshape(64, L2, L2 * 32).transpose(1, 0, 2)          # (L2, 64, L2*32)
    eye = jnp.eye(L2, dtype=f32)
    w2blk = (eye[:, None, :, None] * W2[None, :, None, :]).reshape(L2 * 32, L2 * 16)
    w3blk = (eye[:, None, :, None] * W3[None, :, None, :]).reshape(L2 * 16, L2 * classnum)

    outw = ((L2 * classnum + 127) // 128) * 128        # lane-dense (>=128) class output
    w3blk = jnp.pad(w3blk, ((0, 0), (0, outw - L2 * classnum)))
    cb1 = jnp.tile(p["fc1_b"].astype(f32), L2).reshape(1, L2 * 32)
    cb2 = jnp.tile(p["fc2_b"].astype(f32), L2).reshape(1, L2 * 16)
    cb3 = jnp.pad(jnp.tile(p["fc3_b"].astype(f32), L2),
                  (0, outw - L2 * classnum)).reshape(1, outw)
    return (w1c, b1, w2c, b2, w1blk, cb1, w2blk, cb2, w3blk, cb3), classnum, outw


# ---------------------------------------------------------------------------
# CNN.forward
# ---------------------------------------------------------------------------
def cnn_forward(params, input_data, block_batch=8):
    """input_data: NCL (B, 20, L) -> (class_output, tem_feature, None, None)."""
    x = input_data
    B, Cin, L = x.shape
    assert Cin == 20 and L % 4 == 0
    L1 = (L - 1) // 2 + 1
    L2 = (L1 - 1) // 2 + 1

    TB = min(B, block_batch)
    Bpad = ((B + TB - 1) // TB) * TB

    # x.float(), NCL -> NLC (channels on lanes); pad batch + conv1's spatial halo once.
    x_nlc = jnp.transpose(x.astype(jnp.float32), (0, 2, 1))
    xp = jnp.pad(x_nlc, ((0, Bpad - B), (1, 1), (0, 0)))

    (w1c, b1, w2c, b2, w1blk, cb1, w2blk, cb2, w3blk, cb3), classnum, outw = \
        _prep_weights(params, L2)

    flops = 2 * Bpad * (L * (3 * Cin) * 32 + L1 * (3 * 32) * 64
                        + L2 * 64 * (L2 * 32) + (L2 * 32) * (L2 * 16)
                        + (L2 * 16) * outw)
    bytes_accessed = 4 * (xp.size + w1c.size + b1.size + w2c.size + b2.size
                          + w1blk.size + cb1.size + w2blk.size + cb2.size
                          + w3blk.size + cb3.size + Bpad * L2 * 64 + Bpad * outw)

    feat_nlc, cls_big = pl.pallas_call(
        _cnn_kernel,
        out_shape=(jax.ShapeDtypeStruct((Bpad, L2, 64), jnp.float32),
                   jax.ShapeDtypeStruct((Bpad, outw), jnp.float32)),
        grid=(Bpad // TB,),
        in_specs=[
            pl.BlockSpec((TB, L + 2, Cin), lambda g: (g, 0, 0)),
            pl.BlockSpec((3 * Cin, 32), lambda g: (0, 0)),
            pl.BlockSpec((1, 32), lambda g: (0, 0)),
            pl.BlockSpec((3 * 32, 64), lambda g: (0, 0)),
            pl.BlockSpec((1, 64), lambda g: (0, 0)),
            pl.BlockSpec((L2, 64, L2 * 32), lambda g: (0, 0, 0)),
            pl.BlockSpec((1, L2 * 32), lambda g: (0, 0)),
            pl.BlockSpec((L2 * 32, L2 * 16), lambda g: (0, 0)),
            pl.BlockSpec((1, L2 * 16), lambda g: (0, 0)),
            pl.BlockSpec((L2 * 16, outw), lambda g: (0, 0)),
            pl.BlockSpec((1, outw), lambda g: (0, 0)),
        ],
        out_specs=(pl.BlockSpec((TB, L2, 64), lambda g: (g, 0, 0)),
                   pl.BlockSpec((TB, outw), lambda g: (g, 0))),
        scratch_shapes=[
            pltpu.VMEM((TB, L + 2, 32), jnp.float32),    # padded relu(conv1) for pool1
            pltpu.VMEM((TB, L1 + 2, 32), jnp.float32),   # padded pool1 out for conv2
            pltpu.VMEM((TB, L1 + 2, 64), jnp.float32),   # padded relu(conv2) for pool2
        ],
        compiler_params=pltpu.CompilerParams(dimension_semantics=("parallel",)),
        cost_estimate=pl.CostEstimate(flops=flops, transcendentals=0,
                                      bytes_accessed=bytes_accessed),
    )(xp, w1c, b1, w2c, b2, w1blk, cb1, w2blk, cb2, w3blk, cb3)

    tem_feature = jnp.transpose(feat_nlc[:B], (0, 2, 1))          # NCL (B, 64, L2)
    class_output = cls_big[:B, :L2 * classnum].reshape(B * L2, classnum)
    return class_output, tem_feature, None, None


# ---------------------------------------------------------------------------
# Deterministic parameter init (PyTorch-default-style uniform(-1/sqrt(fan_in), .))
# ---------------------------------------------------------------------------
def init_params(key, classnum=10):
    def u(k, shape, fan_in):
        bound = 1.0 / (fan_in ** 0.5)
        return jax.random.uniform(k, shape, jnp.float32, -bound, bound)

    ks = jax.random.split(key, 10)
    p = {}
    p["conv1_w"] = u(ks[0], (32, 20, 3), 20 * 3)
    p["conv1_b"] = u(ks[1], (32,), 20 * 3)
    p["conv2_w"] = u(ks[2], (64, 32, 3), 32 * 3)
    p["conv2_b"] = u(ks[3], (64,), 32 * 3)
    # TODO(synk): FeatureExtractor.fc (Linear 192->2) is never used in CNN.forward -> omitted.
    p["fc1_w"] = u(ks[4], (32, 64), 64)
    p["fc1_b"] = u(ks[5], (32,), 64)
    p["fc2_w"] = u(ks[6], (16, 32), 32)
    p["fc2_b"] = u(ks[7], (16,), 32)
    p["fc3_w"] = u(ks[8], (classnum, 16), 16)
    p["fc3_b"] = u(ks[9], (classnum,), 16)
    return p


if __name__ == "__main__":
    key = jax.random.PRNGKey(0)
    pkey, xkey = jax.random.split(key)
    classnum = 10
    params = init_params(pkey, classnum=classnum)

    # input_data: NCL (batch=2, channels=20 as conv1 requires, length=16)
    B, C, L = 2, 20, 16
    x = jax.random.normal(xkey, (B, C, L), jnp.float32)

    fwd = jax.jit(cnn_forward)
    class_output, tem_feature, _, _ = fwd(params, x)
    jax.block_until_ready((class_output, tem_feature))

    L2 = L // 4                       # rows produced per batch by feature.view(-1, 64)
    assert class_output.shape == (B * L2, classnum)
    assert tem_feature.shape == (B, 64, L2)
    assert bool(jnp.all(jnp.isfinite(class_output)))
    assert bool(jnp.all(jnp.isfinite(tem_feature)))
    print("KERNEL_OK")
</pallas_src>

<mosaic_0001>
module attributes {stable_mosaic.version = 11 : i64} {
  func.func @_cnn_kernel(%arg0: i32, %arg1: memref<2x18x20xf32, #tpu.memory_space<vmem>>, %arg2: memref<60x32xf32, #tpu.memory_space<vmem>>, %arg3: memref<1x32xf32, #tpu.memory_space<vmem>>, %arg4: memref<96x64xf32, #tpu.memory_space<vmem>>, %arg5: memref<1x64xf32, #tpu.memory_space<vmem>>, %arg6: memref<4x64x128xf32, #tpu.memory_space<vmem>>, %arg7: memref<1x128xf32, #tpu.memory_space<vmem>>, %arg8: memref<128x64xf32, #tpu.memory_space<vmem>>, %arg9: memref<1x64xf32, #tpu.memory_space<vmem>>, %arg10: memref<64x128xf32, #tpu.memory_space<vmem>>, %arg11: memref<1x128xf32, #tpu.memory_space<vmem>>, %arg12: memref<2x4x64xf32, #tpu.memory_space<vmem>>, %arg13: memref<2x128xf32, #tpu.memory_space<vmem>>, %arg14: memref<2x18x32xf32, #tpu.memory_space<vmem>>, %arg15: memref<2x10x32xf32, #tpu.memory_space<vmem>>, %arg16: memref<2x10x64xf32, #tpu.memory_space<vmem>>) attributes {dimension_semantics = [#tpu.dimension_semantics<parallel>], iteration_bounds = array<i64: 1>, scalar_prefetch = 0 : i64, scratch_operands = 3 : i64, tpu.core_type = #tpu.core_type<tc>, window_params = [{transform_indices = @transform_0, window_bounds = array<i64: 2, 18, 20>}, {pipeline_mode = #tpu.pipeline_mode<synchronous>, transform_indices = @transform_1, window_bounds = array<i64: 60, 32>}, {pipeline_mode = #tpu.pipeline_mode<synchronous>, transform_indices = @transform_2, window_bounds = array<i64: 1, 32>}, {pipeline_mode = #tpu.pipeline_mode<synchronous>, transform_indices = @transform_3, window_bounds = array<i64: 96, 64>}, {pipeline_mode = #tpu.pipeline_mode<synchronous>, transform_indices = @transform_4, window_bounds = array<i64: 1, 64>}, {pipeline_mode = #tpu.pipeline_mode<synchronous>, transform_indices = @transform_5, window_bounds = array<i64: 4, 64, 128>}, {pipeline_mode = #tpu.pipeline_mode<synchronous>, transform_indices = @transform_6, window_bounds = array<i64: 1, 128>}, {pipeline_mode = #tpu.pipeline_mode<synchronous>, transform_indices = @transform_7, window_bounds = array<i64: 128, 64>}, {pipeline_mode = #tpu.pipeline_mode<synchronous>, transform_indices = @transform_8, window_bounds = array<i64: 1, 64>}, {pipeline_mode = #tpu.pipeline_mode<synchronous>, transform_indices = @transform_9, window_bounds = array<i64: 64, 128>}, {pipeline_mode = #tpu.pipeline_mode<synchronous>, transform_indices = @transform_10, window_bounds = array<i64: 1, 128>}, {transform_indices = @transform_11, window_bounds = array<i64: 2, 4, 64>}, {transform_indices = @transform_12, window_bounds = array<i64: 2, 128>}]} {
    %c0 = arith.constant 0 : index
    %c0_0 = arith.constant 0 : index
    %c0_1 = arith.constant 0 : index
    %0 = vector.load %arg1[%c0, %c0_0, %c0_1] : memref<2x18x20xf32, #tpu.memory_space<vmem>>, vector<2x18x20xf32>
    %1 = vector.extract_strided_slice %0 {offsets = [0, 0, 0], sizes = [2, 16, 20], strides = [1, 1, 1]} : vector<2x18x20xf32> to vector<2x16x20xf32>
    %2 = vector.extract_strided_slice %0 {offsets = [0, 1, 0], sizes = [2, 16, 20], strides = [1, 1, 1]} : vector<2x18x20xf32> to vector<2x16x20xf32>
    %3 = vector.extract_strided_slice %0 {offsets = [0, 2, 0], sizes = [2, 16, 20], strides = [1, 1, 1]} : vector<2x18x20xf32> to vector<2x16x20xf32>
    %4 = tpu.concatenate %1, %2, %3 in 2 : vector<2x16x20xf32>, vector<2x16x20xf32>, vector<2x16x20xf32> -> vector<2x16x60xf32>
    %5 = vector.shape_cast %4 : vector<2x16x60xf32> to vector<32x60xf32>
    %c0_2 = arith.constant 0 : index
    %c0_3 = arith.constant 0 : index
    %6 = vector.load %arg2[%c0_2, %c0_3] : memref<60x32xf32, #tpu.memory_space<vmem>>, vector<60x32xf32>
    %cst = arith.constant dense<0.000000e+00> : vector<32x32xf32>
    %7 = tpu.matmul %5, %6, %cst {dimension_numbers = #tpu.dot_dimension_numbers<[1], [0], [0], [1], [0, 0, 1, 1], [], []>} : vector<32x60xf32>, vector<60x32xf32>, vector<32x32xf32> -> vector<32x32xf32>
    %c0_4 = arith.constant 0 : index
    %c0_5 = arith.constant 0 : index
    %8 = vector.load %arg3[%c0_4, %c0_5] : memref<1x32xf32, #tpu.memory_space<vmem>>, vector<1x32xf32>
    %9 = vector.broadcast %8 : vector<1x32xf32> to vector<32x32xf32>
    %10 = arith.addf %7, %9 : vector<32x32xf32>
    %cst_6 = arith.constant 0.000000e+00 : f32
    %11 = vector.broadcast %cst_6 : f32 to vector<32x32xf32>
    %12 = arith.maximumf %10, %11 : vector<32x32xf32>
    %13 = vector.shape_cast %12 : vector<32x32xf32> to vector<2x16x32xf32>
    %cst_7 = arith.constant 0.000000e+00 : f32
    %14 = vector.broadcast %cst_7 : f32 to vector<2x1x32xf32>
    %c0_8 = arith.constant 0 : index
    %c0_9 = arith.constant 0 : index
    %c0_10 = arith.constant 0 : index
    %15 = vector.load %arg14[%c0_8, %c0_9, %c0_10] : memref<2x18x32xf32, #tpu.memory_space<vmem>>, vector<2x1x32xf32>
    tpu.vector_store %arg14[%c0_8, %c0_9, %c0_10], %14 {strides = array<i32>} : memref<2x18x32xf32, #tpu.memory_space<vmem>>, vector<2x1x32xf32>,
    %cst_11 = arith.constant 0.000000e+00 : f32
    %16 = vector.broadcast %cst_11 : f32 to vector<2x1x32xf32>
    %c0_12 = arith.constant 0 : index
    %c17 = arith.constant 17 : index
    %c0_13 = arith.constant 0 : index
    %17 = vector.load %arg14[%c0_12, %c17, %c0_13] : memref<2x18x32xf32, #tpu.memory_space<vmem>>, vector<2x1x32xf32>
    tpu.vector_store %arg14[%c0_12, %c17, %c0_13], %16 {strides = array<i32>} : memref<2x18x32xf32, #tpu.memory_space<vmem>>, vector<2x1x32xf32>,
    %c0_14 = arith.constant 0 : index
    %c1 = arith.constant 1 : index
    %c0_15 = arith.constant 0 : index
    %18 = vector.load %arg14[%c0_14, %c1, %c0_15] : memref<2x18x32xf32, #tpu.memory_space<vmem>>, vector<2x16x32xf32>
    tpu.vector_store %arg14[%c0_14, %c1, %c0_15], %13 {strides = array<i32>} : memref<2x18x32xf32, #tpu.memory_space<vmem>>, vector<2x16x32xf32>,
    %c0_16 = arith.constant 0 : index
    %c0_17 = arith.constant 0 : index
    %c0_18 = arith.constant 0 : index
    %19 = tpu.strided_load %arg14[%c0_16, %c0_17, %c0_18] {strides = array<i32: 1, 2, 1>} : memref<2x18x32xf32, #tpu.memory_space<vmem>>, vector<2x8x32xf32>
    %c0_19 = arith.constant 0 : index
    %c1_20 = arith.constant 1 : index
    %c0_21 = arith.constant 0 : index
    %20 = tpu.strided_load %arg14[%c0_19, %c1_20, %c0_21] {strides = array<i32: 1, 2, 1>} : memref<2x18x32xf32, #tpu.memory_space<vmem>>, vector<2x8x32xf32>
    %c0_22 = arith.constant 0 : index
    %c2 = arith.constant 2 : index
    %c0_23 = arith.constant 0 : index
    %21 = tpu.strided_load %arg14[%c0_22, %c2, %c0_23] {strides = array<i32: 1, 2, 1>} : memref<2x18x32xf32, #tpu.memory_space<vmem>>, vector<2x8x32xf32>
    %22 = arith.maximumf %19, %20 : vector<2x8x32xf32>
    %23 = arith.maximumf %22, %21 : vector<2x8x32xf32>
    %cst_24 = arith.constant 0.000000e+00 : f32
    %24 = vector.broadcast %cst_24 : f32 to vector<2x1x32xf32>
    %c0_25 = arith.constant 0 : index
    %c0_26 = arith.constant 0 : index
    %c0_27 = arith.constant 0 : index
    %25 = vector.load %arg15[%c0_25, %c0_26, %c0_27] : memref<2x10x32xf32, #tpu.memory_space<vmem>>, vector<2x1x32xf32>
    tpu.vector_store %arg15[%c0_25, %c0_26, %c0_27], %24 {strides = array<i32>} : memref<2x10x32xf32, #tpu.memory_space<vmem>>, vector<2x1x32xf32>,
    %cst_28 = arith.constant 0.000000e+00 : f32
    %26 = vector.broadcast %cst_28 : f32 to vector<2x1x32xf32>
    %c0_29 = arith.constant 0 : index
    %c9 = arith.constant 9 : index
    %c0_30 = arith.constant 0 : index
    %27 = vector.load %arg15[%c0_29, %c9, %c0_30] : memref<2x10x32xf32, #tpu.memory_space<vmem>>, vector<2x1x32xf32>
    tpu.vector_store %arg15[%c0_29, %c9, %c0_30], %26 {strides = array<i32>} : memref<2x10x32xf32, #tpu.memory_space<vmem>>, vector<2x1x32xf32>,
    %c0_31 = arith.constant 0 : index
    %c1_32 = arith.constant 1 : index
    %c0_33 = arith.constant 0 : index
    %28 = vector.load %arg15[%c0_31, %c1_32, %c0_33] : memref<2x10x32xf32, #tpu.memory_space<vmem>>, vector<2x8x32xf32>
    tpu.vector_store %arg15[%c0_31, %c1_32, %c0_33], %23 {strides = array<i32>} : memref<2x10x32xf32, #tpu.memory_space<vmem>>, vector<2x8x32xf32>,
    %c0_34 = arith.constant 0 : index
    %c0_35 = arith.constant 0 : index
    %c0_36 = arith.constant 0 : index
    %29 = vector.load %arg15[%c0_34, %c0_35, %c0_36] : memref<2x10x32xf32, #tpu.memory_space<vmem>>, vector<2x8x32xf32>
    %c0_37 = arith.constant 0 : index
    %c1_38 = arith.constant 1 : index
    %c0_39 = arith.constant 0 : index
    %30 = vector.load %arg15[%c0_37, %c1_38, %c0_39] : memref<2x10x32xf32, #tpu.memory_space<vmem>>, vector<2x8x32xf32>
    %c0_40 = arith.constant 0 : index
    %c2_41 = arith.constant 2 : index
    %c0_42 = arith.constant 0 : index
    %31 = vector.load %arg15[%c0_40, %c2_41, %c0_42] : memref<2x10x32xf32, #tpu.memory_space<vmem>>, vector<2x8x32xf32>
    %32 = tpu.concatenate %29, %30, %31 in 2 : vector<2x8x32xf32>, vector<2x8x32xf32>, vector<2x8x32xf32> -> vector<2x8x96xf32>
    %33 = vector.shape_cast %32 : vector<2x8x96xf32> to vector<16x96xf32>
    %c0_43 = arith.constant 0 : index
    %c0_44 = arith.constant 0 : index
    %34 = vector.load %arg4[%c0_43, %c0_44] : memref<96x64xf32, #tpu.memory_space<vmem>>, vector<96x64xf32>
    %cst_45 = arith.constant dense<0.000000e+00> : vector<16x64xf32>
    %35 = tpu.matmul %33, %34, %cst_45 {dimension_numbers = #tpu.dot_dimension_numbers<[1], [0], [0], [1], [0, 0, 1, 1], [], []>} : vector<16x96xf32>, vector<96x64xf32>, vector<16x64xf32> -> vector<16x64xf32>
    %c0_46 = arith.constant 0 : index
    %c0_47 = arith.constant 0 : index
    %36 = vector.load %arg5[%c0_46, %c0_47] : memref<1x64xf32, #tpu.memory_space<vmem>>, vector<1x64xf32>
    %37 = vector.broadcast %36 : vector<1x64xf32> to vector<16x64xf32>
    %38 = arith.addf %35, %37 : vector<16x64xf32>
    %cst_48 = arith.constant 0.000000e+00 : f32
    %39 = vector.broadcast %cst_48 : f32 to vector<16x64xf32>
    %40 = arith.maximumf %38, %39 : vector<16x64xf32>
    %41 = vector.shape_cast %40 : vector<16x64xf32> to vector<2x8x64xf32>
    %cst_49 = arith.constant 0.000000e+00 : f32
    %42 = vector.broadcast %cst_49 : f32 to vector<2x1x64xf32>
    %c0_50 = arith.constant 0 : index
    %c0_51 = arith.constant 0 : index
    %c0_52 = arith.constant 0 : index
    %43 = vector.load %arg16[%c0_50, %c0_51, %c0_52] : memref<2x10x64xf32, #tpu.memory_space<vmem>>, vector<2x1x64xf32>
    tpu.vector_store %arg16[%c0_50, %c0_51, %c0_52], %42 {strides = array<i32>} : memref<2x10x64xf32, #tpu.memory_space<vmem>>, vector<2x1x64xf32>,
    %cst_53 = arith.constant 0.000000e+00 : f32
    %44 = vector.broadcast %cst_53 : f32 to vector<2x1x64xf32>
    %c0_54 = arith.constant 0 : index
    %c9_55 = arith.constant 9 : index
    %c0_56 = arith.constant 0 : index
    %45 = vector.load %arg16[%c0_54, %c9_55, %c0_56] : memref<2x10x64xf32, #tpu.memory_space<vmem>>, vector<2x1x64xf32>
    tpu.vector_store %arg16[%c0_54, %c9_55, %c0_56], %44 {strides = array<i32>} : memref<2x10x64xf32, #tpu.memory_space<vmem>>, vector<2x1x64xf32>,
    %c0_57 = arith.constant 0 : index
    %c1_58 = arith.constant 1 : index
    %c0_59 = arith.constant 0 : index
    %46 = vector.load %arg16[%c0_57, %c1_58, %c0_59] : memref<2x10x64xf32, #tpu.memory_space<vmem>>, vector<2x8x64xf32>
    tpu.vector_store %arg16[%c0_57, %c1_58, %c0_59], %41 {strides = array<i32>} : memref<2x10x64xf32, #tpu.memory_space<vmem>>, vector<2x8x64xf32>,
    %c0_60 = arith.constant 0 : index
    %c0_61 = arith.constant 0 : index
    %c0_62 = arith.constant 0 : index
    %47 = tpu.strided_load %arg16[%c0_60, %c0_61, %c0_62] {strides = array<i32: 1, 2, 1>} : memref<2x10x64xf32, #tpu.memory_space<vmem>>, vector<2x4x64xf32>
    %c0_63 = arith.constant 0 : index
    %c1_64 = arith.constant 1 : index
    %c0_65 = arith.constant 0 : index
    %48 = tpu.strided_load %arg16[%c0_63, %c1_64, %c0_65] {strides = array<i32: 1, 2, 1>} : memref<2x10x64xf32, #tpu.memory_space<vmem>>, vector<2x4x64xf32>
    %c0_66 = arith.constant 0 : index
    %c2_67 = arith.constant 2 : index
    %c0_68 = arith.constant 0 : index
    %49 = tpu.strided_load %arg16[%c0_66, %c2_67, %c0_68] {strides = array<i32: 1, 2, 1>} : memref<2x10x64xf32, #tpu.memory_space<vmem>>, vector<2x4x64xf32>
    %50 = arith.maximumf %47, %48 : vector<2x4x64xf32>
    %51 = arith.maximumf %50, %49 : vector<2x4x64xf32>
    %c0_69 = arith.constant 0 : index
    %c0_70 = arith.constant 0 : index
    %c0_71 = arith.constant 0 : index
    %52 = vector.load %arg12[%c0_69, %c0_70, %c0_71] : memref<2x4x64xf32, #tpu.memory_space<vmem>>, vector<2x4x64xf32>
    tpu.vector_store %arg12[%c0_69, %c0_70, %c0_71], %51 {strides = array<i32>} : memref<2x4x64xf32, #tpu.memory_space<vmem>>, vector<2x4x64xf32>,
    %cst_72 = arith.constant 0.000000e+00 : f32
    %53 = vector.broadcast %cst_72 : f32 to vector<2x128xf32>
    %54 = vector.extract_strided_slice %51 {offsets = [0, 0, 0], sizes = [2, 1, 64], strides = [1, 1, 1]} : vector<2x4x64xf32> to vector<2x1x64xf32>
    %55 = vector.shape_cast %54 : vector<2x1x64xf32> to vector<2x64xf32>
    %c0_73 = arith.constant 0 : index
    %c0_74 = arith.constant 0 : index
    %c0_75 = arith.constant 0 : index
    %56 = vector.load %arg6[%c0_73, %c0_74, %c0_75] : memref<4x64x128xf32, #tpu.memory_space<vmem>>, vector<1x64x128xf32>
    %57 = vector.shape_cast %56 : vector<1x64x128xf32> to vector<64x128xf32>
    %cst_76 = arith.constant dense<0.000000e+00> : vector<2x128xf32>
    %58 = tpu.matmul %55, %57, %cst_76 {dimension_numbers = #tpu.dot_dimension_numbers<[1], [0], [0], [1], [0, 0, 1, 1], [], []>} : vector<2x64xf32>, vector<64x128xf32>, vector<2x128xf32> -> vector<2x128xf32>
    %59 = arith.addf %53, %58 : vector<2x128xf32>
    %60 = vector.extract_strided_slice %51 {offsets = [0, 1, 0], sizes = [2, 1, 64], strides = [1, 1, 1]} : vector<2x4x64xf32> to vector<2x1x64xf32>
    %61 = vector.shape_cast %60 : vector<2x1x64xf32> to vector<2x64xf32>
    %c1_77 = arith.constant 1 : index
    %c0_78 = arith.constant 0 : index
    %c0_79 = arith.constant 0 : index
    %62 = vector.load %arg6[%c1_77, %c0_78, %c0_79] : memref<4x64x128xf32, #tpu.memory_space<vmem>>, vector<1x64x128xf32>
    %63 = vector.shape_cast %62 : vector<1x64x128xf32> to vector<64x128xf32>
    %cst_80 = arith.constant dense<0.000000e+00> : vector<2x128xf32>
    %64 = tpu.matmul %61, %63, %cst_80 {dimension_numbers = #tpu.dot_dimension_numbers<[1], [0], [0], [1], [0, 0, 1, 1], [], []>} : vector<2x64xf32>, vector<64x128xf32>, vector<2x128xf32> -> vector<2x128xf32>
    %65 = arith.addf %59, %64 : vector<2x128xf32>
    %66 = vector.extract_strided_slice %51 {offsets = [0, 2, 0], sizes = [2, 1, 64], strides = [1, 1, 1]} : vector<2x4x64xf32> to vector<2x1x64xf32>
    %67 = vector.shape_cast %66 : vector<2x1x64xf32> to vector<2x64xf32>
    %c2_81 = arith.constant 2 : index
    %c0_82 = arith.constant 0 : index
    %c0_83 = arith.constant 0 : index
    %68 = vector.load %arg6[%c2_81, %c0_82, %c0_83] : memref<4x64x128xf32, #tpu.memory_space<vmem>>, vector<1x64x128xf32>
    %69 = vector.shape_cast %68 : vector<1x64x128xf32> to vector<64x128xf32>
    %cst_84 = arith.constant dense<0.000000e+00> : vector<2x128xf32>
    %70 = tpu.matmul %67, %69, %cst_84 {dimension_numbers = #tpu.dot_dimension_numbers<[1], [0], [0], [1], [0, 0, 1, 1], [], []>} : vector<2x64xf32>, vector<64x128xf32>, vector<2x128xf32> -> vector<2x128xf32>
    %71 = arith.addf %65, %70 : vector<2x128xf32>
    %72 = vector.extract_strided_slice %51 {offsets = [0, 3, 0], sizes = [2, 1, 64], strides = [1, 1, 1]} : vector<2x4x64xf32> to vector<2x1x64xf32>
    %73 = vector.shape_cast %72 : vector<2x1x64xf32> to vector<2x64xf32>
    %c3 = arith.constant 3 : index
    %c0_85 = arith.constant 0 : index
    %c0_86 = arith.constant 0 : index
    %74 = vector.load %arg6[%c3, %c0_85, %c0_86] : memref<4x64x128xf32, #tpu.memory_space<vmem>>, vector<1x64x128xf32>
    %75 = vector.shape_cast %74 : vector<1x64x128xf32> to vector<64x128xf32>
    %cst_87 = arith.constant dense<0.000000e+00> : vector<2x128xf32>
    %76 = tpu.matmul %73, %75, %cst_87 {dimension_numbers = #tpu.dot_dimension_numbers<[1], [0], [0], [1], [0, 0, 1, 1], [], []>} : vector<2x64xf32>, vector<64x128xf32>, vector<2x128xf32> -> vector<2x128xf32>
    %77 = arith.addf %71, %76 : vector<2x128xf32>
    %c0_88 = arith.constant 0 : index
    %c0_89 = arith.constant 0 : index
    %78 = vector.load %arg7[%c0_88, %c0_89] : memref<1x128xf32, #tpu.memory_space<vmem>>, vector<1x128xf32>
    %79 = vector.broadcast %78 : vector<1x128xf32> to vector<2x128xf32>
    %80 = arith.addf %77, %79 : vector<2x128xf32>
    %cst_90 = arith.constant 0.000000e+00 : f32
    %81 = vector.broadcast %cst_90 : f32 to vector<2x128xf32>
    %82 = arith.maximumf %80, %81 : vector<2x128xf32>
    %c0_91 = arith.constant 0 : index
    %c0_92 = arith.constant 0 : index
    %83 = vector.load %arg8[%c0_91, %c0_92] : memref<128x64xf32, #tpu.memory_space<vmem>>, vector<128x64xf32>
    %cst_93 = arith.constant dense<0.000000e+00> : vector<2x64xf32>
    %84 = tpu.matmul %82, %83, %cst_93 {dimension_numbers = #tpu.dot_dimension_numbers<[1], [0], [0], [1], [0, 0, 1, 1], [], []>} : vector<2x128xf32>, vector<128x64xf32>, vector<2x64xf32> -> vector<2x64xf32>
    %c0_94 = arith.constant 0 : index
    %c0_95 = arith.constant 0 : index
    %85 = vector.load %arg9[%c0_94, %c0_95] : memref<1x64xf32, #tpu.memory_space<vmem>>, vector<1x64xf32>
    %86 = vector.broadcast %85 : vector<1x64xf32> to vector<2x64xf32>
    %87 = arith.addf %84, %86 : vector<2x64xf32>
    %cst_96 = arith.constant 0.000000e+00 : f32
    %88 = vector.broadcast %cst_96 : f32 to vector<2x64xf32>
    %89 = arith.maximumf %87, %88 : vector<2x64xf32>
    %c0_97 = arith.constant 0 : index
    %c0_98 = arith.constant 0 : index
    %90 = vector.load %arg10[%c0_97, %c0_98] : memref<64x128xf32, #tpu.memory_space<vmem>>, vector<64x128xf32>
    %cst_99 = arith.constant dense<0.000000e+00> : vector<2x128xf32>
    %91 = tpu.matmul %89, %90, %cst_99 {dimension_numbers = #tpu.dot_dimension_numbers<[1], [0], [0], [1], [0, 0, 1, 1], [], []>} : vector<2x64xf32>, vector<64x128xf32>, vector<2x128xf32> -> vector<2x128xf32>
    %c0_100 = arith.constant 0 : index
    %c0_101 = arith.constant 0 : index
    %92 = vector.load %arg11[%c0_100, %c0_101] : memref<1x128xf32, #tpu.memory_space<vmem>>, vector<1x128xf32>
    %93 = vector.broadcast %92 : vector<1x128xf32> to vector<2x128xf32>
    %94 = arith.addf %91, %93 : vector<2x128xf32>
    %c0_102 = arith.constant 0 : index
    %c0_103 = arith.constant 0 : index
    %95 = vector.load %arg13[%c0_102, %c0_103] : memref<2x128xf32, #tpu.memory_space<vmem>>, vector<2x128xf32>
    tpu.vector_store %arg13[%c0_102, %c0_103], %94 {strides = array<i32>} : memref<2x128xf32, #tpu.memory_space<vmem>>, vector<2x128xf32>,
    return
  }
  func.func @transform_0(%arg0: i32) -> (i32, i32, i32) {
    %c0_i32 = arith.constant 0 : i32
    %c0_i32_0 = arith.constant 0 : i32
    %c0_i32_1 = arith.constant 0 : i32
    return %arg0, %c0_i32, %c0_i32_0 : i32, i32, i32
  }
  func.func @transform_1(%arg0: i32) -> (i32, i32) {
    %c0_i32 = arith.constant 0 : i32
    %c0_i32_0 = arith.constant 0 : i32
    %c0_i32_1 = arith.constant 0 : i32
    return %c0_i32, %c0_i32_0 : i32, i32
  }
  func.func @transform_2(%arg0: i32) -> (i32, i32) {
    %c0_i32 = arith.constant 0 : i32
    %c0_i32_0 = arith.constant 0 : i32
    %c0_i32_1 = arith.constant 0 : i32
    return %c0_i32, %c0_i32_0 : i32, i32
  }
  func.func @transform_3(%arg0: i32) -> (i32, i32) {
    %c0_i32 = arith.constant 0 : i32
    %c0_i32_0 = arith.constant 0 : i32
    %c0_i32_1 = arith.constant 0 : i32
    return %c0_i32, %c0_i32_0 : i32, i32
  }
  func.func @transform_4(%arg0: i32) -> (i32, i32) {
    %c0_i32 = arith.constant 0 : i32
    %c0_i32_0 = arith.constant 0 : i32
    %c0_i32_1 = arith.constant 0 : i32
    return %c0_i32, %c0_i32_0 : i32, i32
  }
  func.func @transform_5(%arg0: i32) -> (i32, i32, i32) {
    %c0_i32 = arith.constant 0 : i32
    %c0_i32_0 = arith.constant 0 : i32
    %c0_i32_1 = arith.constant 0 : i32
    %c0_i32_2 = arith.constant 0 : i32
    return %c0_i32, %c0_i32_0, %c0_i32_1 : i32, i32, i32
  }
  func.func @transform_6(%arg0: i32) -> (i32, i32) {
    %c0_i32 = arith.constant 0 : i32
    %c0_i32_0 = arith.constant 0 : i32
    %c0_i32_1 = arith.constant 0 : i32
    return %c0_i32, %c0_i32_0 : i32, i32
  }
  func.func @transform_7(%arg0: i32) -> (i32, i32) {
    %c0_i32 = arith.constant 0 : i32
    %c0_i32_0 = arith.constant 0 : i32
    %c0_i32_1 = arith.constant 0 : i32
    return %c0_i32, %c0_i32_0 : i32, i32
  }
  func.func @transform_8(%arg0: i32) -> (i32, i32) {
    %c0_i32 = arith.constant 0 : i32
    %c0_i32_0 = arith.constant 0 : i32
    %c0_i32_1 = arith.constant 0 : i32
    return %c0_i32, %c0_i32_0 : i32, i32
  }
  func.func @transform_9(%arg0: i32) -> (i32, i32) {
    %c0_i32 = arith.constant 0 : i32
    %c0_i32_0 = arith.constant 0 : i32
    %c0_i32_1 = arith.constant 0 : i32
    return %c0_i32, %c0_i32_0 : i32, i32
  }
  func.func @transform_10(%arg0: i32) -> (i32, i32) {
    %c0_i32 = arith.constant 0 : i32
    %c0_i32_0 = arith.constant 0 : i32
    %c0_i32_1 = arith.constant 0 : i32
    return %c0_i32, %c0_i32_0 : i32, i32
  }
  func.func @transform_11(%arg0: i32) -> (i32, i32, i32) {
    %c0_i32 = arith.constant 0 : i32
    %c0_i32_0 = arith.constant 0 : i32
    %c0_i32_1 = arith.constant 0 : i32
    return %arg0, %c0_i32, %c0_i32_0 : i32, i32, i32
  }
  func.func @transform_12(%arg0: i32) -> (i32, i32) {
    %c0_i32 = arith.constant 0 : i32
    %c0_i32_0 = arith.constant 0 : i32
    return %arg0, %c0_i32 : i32, i32
  }
}

</mosaic_0001>

<bundles_post_ra>
// kernel: tile.18
= control target key start
LH: loop header
LB: loop body
LE: loop exit
PB: predicated region body
PF: predicated region fallthrough
CT: control target
= control target key end

     0   :  { %s22_s0 = inlined_call_operand.vmem [shape: f32[32], index: 0, kind: input, shape index: {}]   ;;  %s23_s1 = inlined_call_operand.vmem [shape: f32[4,32], index: 1, kind: output, shape index: {}]  }
   0x1   :  { %v4_v0 = vld [vmem:[%s22_s0] ss:$0 sm:$0xff] }
   0x2   :  { %5 = vst [vmem:[%s23_s1] sm:$0xf] %v4_v0 }

// kernel: tile.19
= control target key start
LH: loop header
LB: loop body
LE: loop exit
PB: predicated region body
PF: predicated region fallthrough
CT: control target
= control target key end

     0   :  { %vm7_vm0 = vcmask 261120   ;;  %s37_s8 = smov 32   ;;  %s38_s9 = smov 64   ;;  %vm13_vm1 = vcmask 1048320   ;;  %vm19_vm2 = vcmask 785920   ;;  %vm25_vm3 = vcmask 523520   ;;  %s55_s0 = inlined_call_operand.vmem [shape: f32[4,32], index: 0, kind: input, shape index: {}]   ;;  %s56_s1 = inlined_call_operand.vmem [shape: f32[1,128], index: 1, kind: output, shape index: {}]  }
   0x1   :  { %v4_v0 = vld [vmem:[%s55_s0] sm:$0xf]  ;;  %s36_s0 = smov 96  }
   0x2   :  { %5 = vst [vmem:[#allocation1] sm:$0xf] %v4_v0 }
   0x9   :  { %v10_v1 = vld [vmem:[#allocation1 + $0x3] sm:$0x1]   ;;  %v22_v2 = vld [vmem:[#allocation1 + $0x1] sm:$0x1]   ;;  %v6_v3 = vld [vmem:[#allocation1] sm:$0x1]  }
   0xa   :  { %11 = vrot.lane.b32.xlu0 %v10_v1, %s36_s0  ;;  %23 = vrot.lane.b32.xlu1 %v22_v2, %s37_s8  ;;  %v16_v4 = vld [vmem:[#allocation1 + $0x2] sm:$0x1]   ;;  %8 = vst.msk [vmem:[#allocation0] sm:$0x1] %vm7_vm0, %v6_v3  }
   0xe   :  { %17 = vrot.lane.b32.xlu0 %v16_v4, %s38_s9 }
  0x7c   :  { %v12_v5 = vpop.permute.xlu0 %11   ;;  %v24_v6 = vpop.permute.xlu1 %23  }
  0x7d   :  { %14 = vst.msk [vmem:[#allocation0] sm:$0x1] %vm13_vm1, %v12_v5  }
  0x80   :  { %v18_v7 = vpop.permute.xlu0 %17  }
  0x81   :  { %20 = vst.msk [vmem:[#allocation0] sm:$0x1] %vm19_vm2, %v18_v7  }
  0x82   :  { %26 = vst.msk [vmem:[#allocation0] sm:$0x1] %vm25_vm3, %v24_v6  }
  0x89   :  { %v30_v8 = vld [vmem:[#allocation0] sm:$0x1] }
  0x8a   :  { %32 = vst [vmem:[%s56_s1] sm:$0x1] %v30_v8 }

// kernel: tile.23
= control target key start
LH: loop header
LB: loop body
LE: loop exit
PB: predicated region body
PF: predicated region fallthrough
CT: control target
= control target key end

     0   :  { %s22_s0 = inlined_call_operand.vmem [shape: f32[16], index: 0, kind: input, shape index: {}]   ;;  %s23_s1 = inlined_call_operand.vmem [shape: f32[4,16], index: 1, kind: output, shape index: {}]  }
   0x1   :  { %v4_v0 = vld [vmem:[%s22_s0] ss:$0 sm:$0xff] }
   0x2   :  { %5 = vst [vmem:[%s23_s1] sm:$0xf] %v4_v0 }

// kernel: tile.24
= control target key start
LH: loop header
LB: loop body
LE: loop exit
PB: predicated region body
PF: predicated region fallthrough
CT: control target
= control target key end

     0   :  { %vm7_vm0 = vcmask 130048   ;;  %s37_s8 = smov 16   ;;  %s38_s9 = smov 32   ;;  %vm13_vm1 = vcmask 523648   ;;  %vm19_vm2 = vcmask 392448   ;;  %vm25_vm3 = vcmask 261248   ;;  %s55_s0 = inlined_call_operand.vmem [shape: f32[4,16], index: 0, kind: input, shape index: {}]   ;;  %s56_s1 = inlined_call_operand.vmem [shape: f32[1,64], index: 1, kind: output, shape index: {}]  }
   0x1   :  { %v4_v0 = vld [vmem:[%s55_s0] sm:$0xf]  ;;  %s36_s0 = smov 48  }
   0x2   :  { %5 = vst [vmem:[#allocation1] sm:$0xf] %v4_v0 }
   0x9   :  { %v10_v1 = vld [vmem:[#allocation1 + $0x3] sm:$0x1]   ;;  %v22_v2 = vld [vmem:[#allocation1 + $0x1] sm:$0x1]   ;;  %v6_v3 = vld [vmem:[#allocation1] sm:$0x1]  }
   0xa   :  { %11 = vrot.lane.b32.xlu0 %v10_v1, %s36_s0  ;;  %23 = vrot.lane.b32.xlu1 %v22_v2, %s37_s8  ;;  %v16_v4 = vld [vmem:[#allocation1 + $0x2] sm:$0x1]   ;;  %8 = vst.msk [vmem:[#allocation0] sm:$0x1] %vm7_vm0, %v6_v3  }
   0xe   :  { %17 = vrot.lane.b32.xlu0 %v16_v4, %s38_s9 }
  0x7c   :  { %v12_v5 = vpop.permute.xlu0 %11   ;;  %v24_v6 = vpop.permute.xlu1 %23  }
  0x7d   :  { %14 = vst.msk [vmem:[#allocation0] sm:$0x1] %vm13_vm1, %v12_v5  }
  0x80   :  { %v18_v7 = vpop.permute.xlu0 %17  }
  0x81   :  { %20 = vst.msk [vmem:[#allocation0] sm:$0x1] %vm19_vm2, %v18_v7  }
  0x82   :  { %26 = vst.msk [vmem:[#allocation0] sm:$0x1] %vm25_vm3, %v24_v6  }
  0x89   :  { %v30_v8 = vld [vmem:[#allocation0] sm:$0x1] }
  0x8a   :  { %32 = vst [vmem:[%s56_s1] sm:$0x1] %v30_v8 }

// kernel: tile.28
= control target key start
LH: loop header
LB: loop body
LE: loop exit
PB: predicated region body
PF: predicated region fallthrough
CT: control target
= control target key end

     0   :  { %s22_s0 = inlined_call_operand.vmem [shape: f32[10], index: 0, kind: input, shape index: {}]   ;;  %s23_s1 = inlined_call_operand.vmem [shape: f32[4,10], index: 1, kind: output, shape index: {}]  }
   0x1   :  { %v4_v0 = vld [vmem:[%s22_s0] ss:$0 sm:$0xff] }
   0x2   :  { %5 = vst [vmem:[%s23_s1] sm:$0xf] %v4_v0 }

// kernel: tile.29
= control target key start
LH: loop header
LB: loop body
LE: loop exit
PB: predicated region body
PF: predicated region fallthrough
CT: control target
= control target key end

     0   :  { %vm7_vm0 = vcmask 80896   ;;  %s37_s8 = smov 10   ;;  %s38_s9 = smov 20   ;;  %vm13_vm1 = vcmask 326896   ;;  %vm19_vm2 = vcmask 244896   ;;  %vm25_vm3 = vcmask 162896   ;;  %s55_s0 = inlined_call_operand.vmem [shape: f32[4,10], index: 0, kind: input, shape index: {}]   ;;  %s56_s1 = inlined_call_operand.vmem [shape: f32[40], index: 1, kind: output, shape index: {}]  }
   0x1   :  { %v4_v0 = vld [vmem:[%s55_s0] sm:$0xf]  ;;  %s36_s0 = smov 30  }
   0x2   :  { %5 = vst [vmem:[#allocation1] sm:$0xf] %v4_v0 }
   0x9   :  { %v10_v1 = vld [vmem:[#allocation1 + $0x3] sm:$0x1]   ;;  %v22_v2 = vld [vmem:[#allocation1 + $0x1] sm:$0x1]   ;;  %v6_v3 = vld [vmem:[#allocation1] sm:$0x1]  }
   0xa   :  { %11 = vrot.lane.b32.xlu0 %v10_v1, %s36_s0  ;;  %23 = vrot.lane.b32.xlu1 %v22_v2, %s37_s8  ;;  %v16_v4 = vld [vmem:[#allocation1 + $0x2] sm:$0x1]   ;;  %8 = vst.msk [vmem:[#allocation0] sm:$0x1] %vm7_vm0, %v6_v3  }
   0xe   :  { %17 = vrot.lane.b32.xlu0 %v16_v4, %s38_s9 }
  0x7c   :  { %v12_v5 = vpop.permute.xlu0 %11   ;;  %v24_v6 = vpop.permute.xlu1 %23  }
  0x7d   :  { %14 = vst.msk [vmem:[#allocation0] sm:$0x1] %vm13_vm1, %v12_v5  }
  0x80   :  { %v18_v7 = vpop.permute.xlu0 %17  }
  0x81   :  { %20 = vst.msk [vmem:[#allocation0] sm:$0x1] %vm19_vm2, %v18_v7  }
  0x82   :  { %26 = vst.msk [vmem:[#allocation0] sm:$0x1] %vm25_vm3, %v24_v6  }
  0x89   :  { %v30_v8 = vld [vmem:[#allocation0] sm:$0x1] }
  0x8a   :  { %32 = vst [vmem:[%s56_s1] sm:$0x1] %v30_v8 }

// kernel: cnn_forward.1
= control target key start
LH: loop header
LB: loop body
LE: loop exit
PB: predicated region body
PF: predicated region fallthrough
CT: control target
= control target key end

     0   :  { %vm76_vm0 = vcmask 1045504   ;;  %vm53_vm1 = vcmask 1046528   ;;  %s1434_s21 = smov 40   ;;  %s1909_s0 = inlined_call_operand.vmem [shape: f32[2,18,20], index: 0, kind: input, shape index: {}]   ;;  %s1910_s1 = inlined_call_operand.vmem [shape: f32[60,32], index: 1, kind: input, shape index: {}]   ;;  %s1911_s2 = inlined_call_operand.vmem [shape: f32[1,32], index: 2, kind: input, shape index: {}]   ;;  %s1912_s3 = inlined_call_operand.vmem [shape: f32[96,64], index: 3, kind: input, shape index: {}]   ;;  %s1913_s4 = inlined_call_operand.vmem [shape: f32[1,64], index: 4, kind: input, shape index: {}]   ;;  %s1914_s5 = inlined_call_operand.vmem [shape: f32[4,64,128], index: 5, kind: input, shape index: {}]   ;;  %s1915_s6 = inlined_call_operand.vmem [shape: f32[1,128], index: 6, kind: input, shape index: {}]   ;;  %s1916_s7 = inlined_call_operand.vmem [shape: f32[128,64], index: 7, kind: input, shape index: {}]   ;;  %s1917_s8 = inlined_call_operand.vmem [shape: f32[1,64], index: 8, kind: input, shape index: {}]   ;;  %s1918_s9 = inlined_call_operand.vmem [shape: f32[64,128], index: 9, kind: input, shape index: {}]   ;;  %s1919_s10 = inlined_call_operand.vmem [shape: f32[1,128], index: 10, kind: input, shape index: {}]   ;;  %s1920_s11 = inlined_call_operand.hbm [shape: f32[2,4,64], index: 11, kind: output, shape index: {0}]   ;;  %s1921_s12 = inlined_call_operand.vmem [shape: f32[2,128], index: 12, kind: output, shape index: {1}]  }
   0x1   :  { %v1512_v0 = vld [vmem:[%s1909_s0] sm:$0xff]  ;;  %v1517_v1 = vld [vmem:[%s1909_s0 + $0x8] sm:$0xff]  ;;  %v43_v6 = vld [vmem:[%s1909_s0 + $0x10] sm:$0x3] }
   0x2   :  { %v77_v2 = vrot.slane %v1512_v0, 2  ;;  %v78_v3 = vrot.slane %v1517_v1, 2  ;;  %v54_v4 = vrot.slane %v1512_v0, 1  ;;  %v55_v5 = vrot.slane %v1517_v1, 1  ;;  %v1529_v9 = vld [vmem:[%s1909_s0 + $0x20] sm:$0xff]  ;;  %v1537_v11 = vld [vmem:[%s1909_s0 + $0x18] sm:$0xff] }
   0x3   :  { %v80_v7 = vrot.slane %v43_v6, 2  ;;  %v57_v8 = vrot.slane %v43_v6, 1  ;;  %v46_v10 = vld [vmem:[%s1909_s0 + $0x28] sm:$0x3]  ;;  %v109_v14 = vld [vmem:[%s1910_s1] sm:$0xff]  ;;  %v111_v16 = vld [vmem:[%s1910_s1 + $0x10] sm:$0xff] }
   0x4   :  { %v79_v12 = vsel %vm76_vm0, %v77_v2, %v78_v3  ;;  %v56_v13 = vsel %vm53_vm1, %v54_v4, %v55_v5  ;;  %v110_v15 = vld [vmem:[%s1910_s1 + $0x8] sm:$0xff]  ;;  %s1435_s0 = smov 20   ;;  %v60_v17 = vrot.slane %v1529_v9, 1  ;;  %v62_v18 = vrot.slane %v46_v10, 1  ;;  %v112_v19 = vld [vmem:[%s1910_s1 + $0x18] sm:$0xff] }
   0x5   :  { %87 = vrot.lane.b32.xlu1 %v79_v12, %s1434_s21  ;;  %64 = vrot.lane.b32.xlu0 %v56_v13, %s1435_s0  ;;  %v81_v20 = vsel %vm76_vm0, %v78_v3, %v80_v7  ;;  %v58_v21 = vsel %vm53_vm1, %v55_v5, %v57_v8  ;;  %v59_v22 = vrot.slane %v1537_v11, 1  ;;  %v1274_v23 = vpack.c.bf16 %v110_v15, %v109_v14 }
   0x6   :  { %v1278_v24 = vpack.c.bf16 %v112_v19, %v111_v16 }
   0x7   :  { %18 = vsyncpa [#allocation6], 0  ;;  %1275 = vmatprep.subr.bf16.mxu0 %v1274_v23  ;;  %v113_v25 = vld [vmem:[%s1910_s1 + $0x20] sm:$0xff]  ;;  %v114_v26 = vld [vmem:[%s1910_s1 + $0x28] sm:$0xff]  ;;  %v83_v27 = vrot.slane %v1529_v9, 2  ;;  %v63_v28 = vsel %vm53_vm1, %v60_v17, %v62_v18  ;;  %v61_v29 = vsel %vm53_vm1, %v59_v22, %v60_v17  ;;  %v85_v30 = vrot.slane %v46_v10, 2 }
   0x8   :  { %v82_v31 = vrot.slane %v1537_v11, 2  ;;  %1277 = vmatpush3.bf16.msra.mxu0 %v1274_v23  ;;  %v1282_v32 = vpack.c.bf16 %v114_v26, %v113_v25  ;;  %v115_v33 = vld [vmem:[%s1910_s1 + $0x30] sm:$0xff]  ;;  %v116_v34 = vld [vmem:[%s1910_s1 + $0x38] sm:$0xf]  ;;  %vm137_vm2 = vcmask 1043456   ;;  %vm1436_vm3 = vmmov 1  }
   0x9   :  { %89 = vrot.lane.b32.xlu1 %v81_v20, %s1434_s21  ;;  %66 = vrot.lane.b32.xlu0 %v58_v21, %s1435_s0  ;;  %v86_v35 = vsel %vm76_vm0, %v83_v27, %v85_v30  ;;  %v1286_v37 = vpack.c.bf16 %v116_v34, %v115_v33  ;;  %vm1287_vm4 = vmpackc.low %vm137_vm2, %vm1436_vm3  ;;  %vm99_vm5 = vcmask 162816   ;;  %vm104_vm6 = vcmask 326656   ;;  %v288_v55 = vld [vmem:[%s1912_s3] sm:$0xff]  ;;  %v289_v56 = vld [vmem:[%s1912_s3 + $0x8] sm:$0xff]  ;;  %s1438_s18 = smov 32   ;;  %s1439_s19 = smov 64  }
   0xa   :  { %1279 = vmatprep.subr.bf16.mxu0 %v1278_v24  ;;  %v84_v36 = vsel %vm76_vm0, %v82_v31, %v83_v27  ;;  %vm124_vm7 = vcmask 490496   ;;  %vm230_vm8 = vcmask 253952   ;;  %v1437_v54 = vmov 0.0   ;;  %v290_v57 = vld [vmem:[%s1912_s3 + $0x10] sm:$0xff]  ;;  %v291_v59 = vld [vmem:[%s1912_s3 + $0x18] sm:$0xff]  ;;  %v292_v61 = vld [vmem:[%s1912_s3 + $0x20] sm:$0xff] }
   0xb   :  { %231 = vst.msk [vmem:[#allocation2] sm:$0x1] %vm230_vm8, %v1437_v54  ;;  %232 = vst.msk [vmem:[#allocation2 + $0x18] sm:$0x1] %vm230_vm8, %v1437_v54  ;;  %v1292_v58 = vpack.c.bf16 %v289_v56, %v288_v55  ;;  %v1296_v60 = vpack.c.bf16 %v291_v59, %v290_v57  ;;  %v293_v62 = vld [vmem:[%s1912_s3 + $0x28] sm:$0xff]  ;;  %vm235_vm9 = vcmask 261120  }
   0xc   :  { %1281 = vmatpush3.bf16.msra.mxu0 %v1278_v24  ;;  %255 = vst.msk [vmem:[#allocation3] sm:$0x1] %vm230_vm8, %v1437_v54  ;;  %256 = vst.msk [vmem:[#allocation3 + $0x10] sm:$0x1] %vm230_vm8, %v1437_v54  ;;  %v1300_v63 = vpack.c.bf16 %v293_v62, %v292_v61  ;;  %v294_v12 = vld [vmem:[%s1912_s3 + $0x30] sm:$0xff]  ;;  %v295_v13 = vld [vmem:[%s1912_s3 + $0x38] sm:$0xff] }
   0xd   :  { %70 = vrot.lane.b32.xlu1 %v63_v28, %s1435_s0  ;;  %68 = vrot.lane.b32.xlu0 %v61_v29, %s1435_s0  ;;  %257 = vst.msk [vmem:[#allocation3 + $0x9] sm:$0x1] %vm230_vm8, %v1437_v54  ;;  %258 = vst.msk [vmem:[#allocation3 + $0x19] sm:$0x1] %vm230_vm8, %v1437_v54  ;;  %v1304_v15 = vpack.c.bf16 %v295_v13, %v294_v12  ;;  %v296_v20 = vld [vmem:[%s1912_s3 + $0x40] sm:$0xff]  ;;  %v297_v21 = vld [vmem:[%s1912_s3 + $0x48] sm:$0xff] }
   0xe   :  { %1283 = vmatprep.subr.bf16.mxu0 %v1282_v32  ;;  %1293 = vmatprep.subr.bf16.mxu1 %v1292_v58  ;;  %v1308_v23 = vpack.c.bf16 %v297_v21, %v296_v20  ;;  %v298_v24 = vld [vmem:[%s1912_s3 + $0x50] sm:$0xff]  ;;  %v299_v25 = vld [vmem:[%s1912_s3 + $0x58] sm:$0xff]  ;;  %vm285_vm10 = vcmask 523264   ;;  %vm307_vm11 = vcmask 785408   ;;  %vm391_vm12 = vcmask 516096   ;;  %v420_v59 = vld [vmem:[%s1914_s5 + $0x20] sm:$0xff] }
   0xf   :  { %1295 = vmatpush3.bf16.msra.mxu1 %v1292_v58  ;;  %v1312_v26 = vpack.c.bf16 %v299_v25, %v298_v24  ;;  %v419_v55 = vld [vmem:[%s1914_s5 + $0x18] sm:$0xff]  ;;  %392 = vst.msk [vmem:[#allocation4] sm:$0x1] %vm391_vm12, %v1437_v54  ;;  %393 = vst.msk [vmem:[#allocation4 + $0x10] sm:$0x1] %vm391_vm12, %v1437_v54  ;;  %v977_v57 = vld [vmem:[%s1914_s5 + $0x50] sm:$0xff] }
  0x10   :  { %1285 = vmatpush3.bf16.msra.mxu0 %v1282_v32  ;;  %1297 = vmatprep.subr.bf16.mxu1 %v1296_v60  ;;  %v978_v58 = vld [vmem:[%s1914_s5 + $0x58] sm:$0xff]  ;;  %v421_v61 = vld [vmem:[%s1914_s5 + $0x28] sm:$0xff]  ;;  %v979_v62 = vld [vmem:[%s1914_s5 + $0x60] sm:$0xff]  ;;  %vm1441_vm13 = vmmov 0   ;;  %vm413_vm14 = vcmask 519168   ;;  %vm436_vm15 = vcmask 1041409  }
  0x11   :  { %93 = vrot.lane.b32.xlu1 %v86_v35, %s1434_s21  ;;  %91 = vrot.lane.b32.xlu0 %v84_v36, %s1434_s21 }
  0x12   :  { %1288 = vmatprep.subr.msk.bf16.mxu0 %vm1287_vm4, %v1286_v37 }
  0x13   :  { %1299 = vmatpush3.bf16.msra.mxu1 %v1296_v60  ;;  %v1320_v60 = vpack.c.bf16 %v978_v58, %v977_v57  ;;  %v763_v57 = vld [vmem:[%s1916_s7] sm:$0xff]  ;;  %v764_v58 = vld [vmem:[%s1916_s7 + $0x8] sm:$0xff] }
  0x14   :  { %1291 = vmatpush3.bf16.msk.msra.mxu0 %vm1287_vm4, %v1286_v37  ;;  %1301 = vmatprep.subr.bf16.mxu1 %v1300_v63 }
  0x17   :  { %1303 = vmatpush3.bf16.msra.mxu1 %v1300_v63  ;;  %v980_v63 = vld [vmem:[%s1914_s5 + $0x68] sm:$0xff] }
  0x18   :  { %1305 = vmatprep.subr.bf16.mxu1 %v1304_v15 }
  0x1b   :  { %1307 = vmatpush3.bf16.msra.mxu1 %v1304_v15 }
  0x1c   :  { %1309 = vmatprep.subr.bf16.mxu1 %v1308_v23 }
  0x1f   :  { %1311 = vmatpush3.bf16.msra.mxu1 %v1308_v23  ;;  %v995_v23 = vld [vmem:[%s1914_s5 + $0xc8] sm:$0xff] }
  0x20   :  { %1313 = vmatprep.subr.bf16.mxu1 %v1312_v26 }
  0x23   :  { %1315 = vmatpush3.bf16.msra.mxu1 %v1312_v26  ;;  %v985_v26 = vld [vmem:[%s1914_s5 + $0x80] sm:$0xff] }
  0x77   :  { %v88_v38 = vpop.permute.xlu1 %87  ;;  %v65_v39 = vpop.permute.xlu0 %64 }
  0x78   :  { %v100_v40 = vsel %vm99_vm5, %v1512_v0, %v65_v39  ;;  %v966_v0 = vld [vmem:[%s1911_s2] ss:$0 sm:$0xff] }
  0x79   :  { %v105_v41 = vsel %vm104_vm6, %v100_v40, %v88_v38 }
  0x7a   :  { %1111 = vmatprep.mubr.msk.f32.mxu0 %vm124_vm7, %v105_v41 }
  0x7b   :  { %v90_v42 = vpop.permute.xlu1 %89  ;;  %v67_v43 = vpop.permute.xlu0 %66 }
  0x7c   :  { %v101_v44 = vsel %vm99_vm5, %v1517_v1, %v67_v43 }
  0x7d   :  { %v106_v45 = vsel %vm104_vm6, %v101_v44, %v90_v42 }
  0x7e   :  { %1112 = vmatmul.mubr.msk.f32.vlgmr.msra.gmra.mrb[0].mxu0 %vm124_vm7, %v106_v45 }
  0x7f   :  { %v71_v46 = vpop.permute.xlu1 %70  ;;  %v69_v47 = vpop.permute.xlu0 %68 }
  0x80   :  { %v103_v48 = vsel %vm99_vm5, %v1529_v9, %v71_v46  ;;  %v102_v49 = vsel %vm99_vm5, %v1537_v11, %v69_v47  ;;  %v416_v46 = vld [vmem:[%s1914_s5] sm:$0xff]  ;;  %v417_v47 = vld [vmem:[%s1914_s5 + $0x8] sm:$0xff] }
  0x83   :  { %v94_v50 = vpop.permute.xlu1 %93  ;;  %v92_v51 = vpop.permute.xlu0 %91 }
  0x84   :  { %v108_v52 = vsel %vm104_vm6, %v103_v48, %v94_v50  ;;  %v107_v53 = vsel %vm104_vm6, %v102_v49, %v92_v51  ;;  %v1329_v48 = vpack.c.bf16 %v417_v47, %v416_v46  ;;  %v975_v49 = vld [vmem:[%s1914_s5 + $0x40] sm:$0xff]  ;;  %v976_v50 = vld [vmem:[%s1914_s5 + $0x48] sm:$0xff]  ;;  %v1440_v51 = vmov 0.0|0.0   ;;  %v1000_v47 = vld [vmem:[%s1914_s5 + $0xf0] sm:$0xff] }
  0x85   :  { %1114 = vmatprep.mubr.msk.f32.mxu0 %vm124_vm7, %v107_v53  ;;  %1328 = vmatprep.subr.bf16.mxu1 %v1440_v51  ;;  %v418_v53 = vld [vmem:[%s1914_s5 + $0x10] sm:$0xff] }
  0x86   :  { %1115 = vmatmul.mubr.msk.f32.gmra.mrb[2].mxu0 %vm124_vm7, %v108_v52  ;;  %1316 = vmatprep.subr.bf16.mxu0 %v1440_v51  ;;  %v1317_v52 = vpack.c.bf16 %v976_v50, %v975_v49  ;;  %v1332_v56 = vpack.c.bf16 %v419_v55, %v418_v53  ;;  %v991_v49 = vld [vmem:[%s1914_s5 + $0xb0] sm:$0xff]  ;;  %v992_v50 = vld [vmem:[%s1914_s5 + $0xb8] sm:$0xff] }
  0x87   :  { %1160 = vmatprep.mubr.msk.f32.mxu0 %vm1441_vm13, %v1437_v54  ;;  %v1350_v53 = vpack.c.bf16 %v992_v50, %v991_v49 }
  0x88   :  { %1318 = vmatpush3.bf16.msra.mxu0 %v1317_v52 }
  0x89   :  { %1319 = vmatprep.subr.bf16.mxu0 %v1440_v51 }
  0x8c   :  { %1321 = vmatpush3.bf16.msra.mxu0 %v1320_v60 }
  0x8d   :  { %1322 = vmatprep.subr.bf16.mxu0 %v1440_v51 }
 0x151   :  { %v1113_v1 = vpop.f32.mrb[0].mxu0 }
 0x152   :  { %v213_v2 = vadd.f32 %v1113_v1, %v966_v0  ;;  %v207_v3 = vpop.f32.mrb[1].mxu0  ;;  %v1323_v1 = vpack.c.bf16 %v980_v63, %v979_v62  ;;  %v765_v63 = vld [vmem:[%s1916_s7 + $0x10] sm:$0xff] }
 0x153   :  { %v208_v4 = vadd.f32 %v966_v0, %v207_v3  ;;  %v423_v3 = vld [vmem:[%s1914_s5 + $0x38] sm:$0xff] }
 0x154   :  { %v227_v5 = vmax.f32 %v213_v2, 0.0  ;;  %v422_v2 = vld [vmem:[%s1914_s5 + $0x30] sm:$0xff]  ;;  %1324 = vmatpush3.bf16.msra.mxu0 %v1323_v1 }
 0x155   :  { %v226_v6 = vmax.f32 %v208_v4, 0.0  ;;  %v981_v4 = vld [vmem:[%s1914_s5 + $0x70] sm:$0xff]  ;;  %1325 = vmatprep.subr.bf16.mxu0 %v1440_v51 }
 0x156   :  { %237 = vst.msk [vmem:[#allocation2 + $0x9] sm:$0xff] %vm235_vm9, %v227_v5  ;;  %v982_v5 = vld [vmem:[%s1914_s5 + $0x78] sm:$0xff] }
 0x157   :  { %236 = vst.msk [vmem:[#allocation2 + $0x1] sm:$0xff] %vm235_vm9, %v226_v6  ;;  %v1338_v6 = vpack.c.bf16 %v423_v3, %v422_v2  ;;  %v767_v3 = vld [vmem:[%s1916_s7 + $0x20] sm:$0xff] }
 0x159   :  { %v1116_v7 = vpop.f32.mrb[2].mxu0 }
 0x15a   :  { %v223_v8 = vadd.f32 %v1116_v7, %v966_v0  ;;  %v217_v9 = vpop.f32.mrb[3].mxu0  ;;  %v1326_v7 = vpack.c.bf16 %v982_v5, %v981_v4  ;;  %v768_v4 = vld [vmem:[%s1916_s7 + $0x28] sm:$0xff] }
 0x15b   :  { %v218_v10 = vadd.f32 %v966_v0, %v217_v9  ;;  %v1335_v0 = vpack.c.bf16 %v421_v61, %v420_v59  ;;  %v1365_v61 = vpack.c.bf16 %v764_v58, %v763_v57  ;;  %v1371_v5 = vpack.c.bf16 %v768_v4, %v767_v3 }
 0x15c   :  { %v229_v11 = vmax.f32 %v223_v8, 0.0  ;;  %1327 = vmatpush3.bf16.msra.mxu0 %v1326_v7  ;;  %v972_v8 = vld [vmem:[%s1913_s4] ss:$0 sm:$0xff] }
 0x15d   :  { %v228_v14 = vmax.f32 %v218_v10, 0.0  ;;  %1340 = vmatprep.subr.bf16.mxu0 %v1440_v51 }
 0x15e   :  { %v240_v16 = vld [vmem:[#allocation2] ss:$2 sm:$0xff]  ;;  %v244_v17 = vld [vmem:[#allocation2 + $0x1] ss:$2 sm:$0xff]  ;;  %239 = vst.msk [vmem:[#allocation2 + $0x21] sm:$0xff] %vm235_vm9, %v229_v11 }
 0x15f   :  { %v251_v18 = vmax.f32 %v240_v16, %v244_v17  ;;  %238 = vst.msk [vmem:[#allocation2 + $0x19] sm:$0xff] %vm235_vm9, %v228_v14  ;;  %v248_v19 = vld [vmem:[#allocation2 + $0x2] ss:$2 sm:$0xff] }
 0x161   :  { %v253_v22 = vmax.f32 %v251_v18, %v248_v19 }
 0x163   :  { %259 = vst.msk [vmem:[#allocation3 + $0x1] sm:$0xff] %vm235_vm9, %v253_v22  ;;  %v994_v22 = vld [vmem:[%s1914_s5 + $0xc0] sm:$0xff] }
 0x166   :  { %v242_v27 = vld [vmem:[#allocation2 + $0x18] ss:$2 sm:$0xff]  ;;  %v246_v28 = vld [vmem:[#allocation2 + $0x19] ss:$2 sm:$0xff] }
 0x167   :  { %v252_v29 = vmax.f32 %v242_v27, %v246_v28  ;;  %v250_v30 = vld [vmem:[#allocation2 + $0x1a] ss:$2 sm:$0xff] }
 0x168   :  { %v986_v27 = vld [vmem:[%s1914_s5 + $0x88] sm:$0xff] }
 0x169   :  { %v254_v31 = vmax.f32 %v252_v29, %v250_v30  ;;  %v1353_v30 = vpack.c.bf16 %v995_v23, %v994_v22  ;;  %v859_v22 = vld [vmem:[%s1918_s9 + $0x10] sm:$0xff] }
 0x16a   :  { %v263_v32 = vld [vmem:[#allocation3 + $0x1] sm:$0xff] }
 0x16b   :  { %269 = vrot.lane.b32.xlu0 %v263_v32, %s1438_s18  ;;  %260 = vst.msk [vmem:[#allocation3 + $0x11] sm:$0xff] %vm235_vm9, %v254_v31  ;;  %v265_v33 = vld [vmem:[#allocation3 + $0x2] sm:$0xff]  ;;  %v1341_v32 = vpack.c.bf16 %v986_v27, %v985_v26  ;;  %v861_v26 = vld [vmem:[%s1918_s9 + $0x20] sm:$0xff]  ;;  %v862_v27 = vld [vmem:[%s1918_s9 + $0x28] sm:$0xff] }
 0x16c   :  { %v261_v37 = vld [vmem:[#allocation3] sm:$0xff] }
 0x16f   :  { %277 = vrot.lane.b32.xlu0 %v265_v33, %s1439_s19  ;;  %v996_v33 = vld [vmem:[%s1914_s5 + $0xd0] sm:$0xff] }
 0x172   :  { %v264_v34 = vld [vmem:[#allocation3 + $0x11] sm:$0xff] }
 0x173   :  { %271 = vrot.lane.b32.xlu1 %v264_v34, %s1438_s18  ;;  %v266_v35 = vld [vmem:[#allocation3 + $0x12] sm:$0xff]  ;;  %v997_v34 = vld [vmem:[%s1914_s5 + $0xd8] sm:$0xff] }
 0x174   :  { %v262_v42 = vld [vmem:[#allocation3 + $0x10] sm:$0xff] }
 0x177   :  { %279 = vrot.lane.b32.xlu1 %v266_v35, %s1439_s19 }
 0x1dd   :  { %v270_v36 = vpop.permute.xlu0 %269 }
 0x1de   :  { %v283_v38 = vsel %vm235_vm9, %v261_v37, %v270_v36  ;;  %v987_v36 = vld [vmem:[%s1914_s5 + $0x90] sm:$0xff]  ;;  %v988_v37 = vld [vmem:[%s1914_s5 + $0x98] sm:$0xff] }
 0x1e1   :  { %v278_v39 = vpop.permute.xlu0 %277 }
 0x1e2   :  { %v286_v40 = vsel %vm285_vm10, %v283_v38, %v278_v39  ;;  %v1356_v39 = vpack.c.bf16 %v997_v34, %v996_v33 }
 0x1e3   :  { %1141 = vmatprep.mubr.msk.f32.mxu1 %vm307_vm11, %v286_v40  ;;  %v1344_v40 = vpack.c.bf16 %v988_v37, %v987_v36 }
 0x1e5   :  { %v272_v41 = vpop.permute.xlu1 %271 }
 0x1e6   :  { %v284_v43 = vsel %vm235_vm9, %v262_v42, %v272_v41  ;;  %v998_v41 = vld [vmem:[%s1914_s5 + $0xe0] sm:$0xff]  ;;  %v999_v42 = vld [vmem:[%s1914_s5 + $0xe8] sm:$0xff] }
 0x1e9   :  { %v280_v44 = vpop.permute.xlu1 %279 }
 0x1ea   :  { %v287_v45 = vsel %vm285_vm10, %v284_v43, %v280_v44  ;;  %v989_v43 = vld [vmem:[%s1914_s5 + $0xa0] sm:$0xff]  ;;  %v990_v44 = vld [vmem:[%s1914_s5 + $0xa8] sm:$0xff] }
 0x1eb   :  { %1142 = vmatmul.mubr.msk.f32.vlgmr.msra.gmra.mrb[0].mxu1 %vm307_vm11, %v287_v45  ;;  %v1359_v45 = vpack.c.bf16 %v999_v42, %v998_v41  ;;  %v1347_v46 = vpack.c.bf16 %v990_v44, %v989_v43  ;;  %v864_v43 = vld [vmem:[%s1918_s9 + $0x38] sm:$0xff] }
 0x1ec   :  { %1330 = vmatpush3.bf16.msra.mxu1 %v1329_v48  ;;  %1179 = vmatprep.mubr.msk.f32.mxu1 %vm1441_vm13, %v1437_v54  ;;  %v1001_v48 = vld [vmem:[%s1914_s5 + $0xf8] sm:$0xff] }
 0x1ed   :  { %1331 = vmatprep.subr.bf16.mxu1 %v1440_v51  ;;  %v1362_v52 = vpack.c.bf16 %v1001_v48, %v1000_v47 }
 0x1f0   :  { %1333 = vmatpush3.bf16.msra.mxu1 %v1332_v56 }
 0x1f1   :  { %1334 = vmatprep.subr.bf16.mxu1 %v1440_v51 }
 0x1f4   :  { %1336 = vmatpush3.bf16.msra.mxu1 %v1335_v0  ;;  %v766_v0 = vld [vmem:[%s1916_s7 + $0x18] sm:$0xff] }
 0x1f5   :  { %1337 = vmatprep.subr.bf16.mxu1 %v1440_v51  ;;  %v1368_v2 = vpack.c.bf16 %v766_v0, %v765_v63 }
 0x1f8   :  { %1339 = vmatpush3.bf16.msra.mxu1 %v1338_v6  ;;  %v769_v6 = vld [vmem:[%s1916_s7 + $0x30] sm:$0xff] }
 0x1f9   :  { %1352 = vmatprep.subr.bf16.mxu1 %v1440_v51 }
 0x2be   :  { %v1143_v9 = vpop.f32.mrb[0].mxu1 }
 0x2bf   :  { %v386_v10 = vadd.f32 %v1143_v9, %v972_v8  ;;  %v380_v11 = vpop.f32.mrb[1].mxu1  ;;  %v772_v9 = vld [vmem:[%s1916_s7 + $0x48] sm:$0xff] }
 0x2c0   :  { %v381_v12 = vadd.f32 %v972_v8, %v380_v11  ;;  %v771_v8 = vld [vmem:[%s1916_s7 + $0x40] sm:$0xff]  ;;  %v773_v11 = vld [vmem:[%s1916_s7 + $0x50] sm:$0xff] }
 0x2c1   :  { %v390_v13 = vmax.f32 %v386_v10, 0.0  ;;  %v1377_v10 = vpack.c.bf16 %v772_v9, %v771_v8 }
 0x2c2   :  { %v389_v14 = vmax.f32 %v381_v12, 0.0  ;;  %v774_v12 = vld [vmem:[%s1916_s7 + $0x58] sm:$0xff] }
 0x2c3   :  { %397 = vst.msk [vmem:[#allocation4 + $0x11] sm:$0xff] %vm285_vm10, %v390_v13  ;;  %v1380_v13 = vpack.c.bf16 %v774_v12, %v773_v11 }
 0x2c4   :  { %396 = vst.msk [vmem:[#allocation4 + $0x1] sm:$0xff] %vm285_vm10, %v389_v14  ;;  %v775_v14 = vld [vmem:[%s1916_s7 + $0x60] sm:$0xff] }
 0x2ca   :  { %v400_v15 = vld [vmem:[#allocation4 + $0x10] ss:$2 sm:$0xf]  ;;  %v404_v16 = vld [vmem:[#allocation4 + $0x11] ss:$2 sm:$0xf] }
 0x2cb   :  { %v398_v17 = vld [vmem:[#allocation4] ss:$2 sm:$0xf]  ;;  %v402_v18 = vld [vmem:[#allocation4 + $0x1] ss:$2 sm:$0xf]  ;;  %v410_v19 = vmax.f32 %v400_v15, %v404_v16 }
 0x2cc   :  { %v408_v20 = vld [vmem:[#allocation4 + $0x12] ss:$2 sm:$0xf]  ;;  %v409_v21 = vmax.f32 %v398_v17, %v402_v18  ;;  %v406_v24 = vld [vmem:[#allocation4 + $0x2] ss:$2 sm:$0xf] }
 0x2cd   :  { %v1727_v25 = vmax.f32 %v410_v19, %v408_v20  ;;  %v776_v15 = vld [vmem:[%s1916_s7 + $0x68] sm:$0xff]  ;;  %v777_v17 = vld [vmem:[%s1916_s7 + $0x70] sm:$0xff]  ;;  %v778_v18 = vld [vmem:[%s1916_s7 + $0x78] sm:$0xff] }
 0x2ce   :  { %v411_v28 = vmax.f32 %v409_v21, %v406_v24  ;;  %v1383_v16 = vpack.c.bf16 %v776_v15, %v775_v14  ;;  %v1386_v19 = vpack.c.bf16 %v778_v18, %v777_v17  ;;  %v857_v20 = vld [vmem:[%s1918_s9] sm:$0xff]  ;;  %v858_v21 = vld [vmem:[%s1918_s9 + $0x8] sm:$0xff]  ;;  %v860_v24 = vld [vmem:[%s1918_s9 + $0x18] sm:$0xff] }
 0x2cf   :  { %v510_v29 = vrot.slane %v1727_v25, 7  ;;  %415 = vst.msk [vmem:[#allocation5 + $0x4] sm:$0xf] %vm413_vm14, %v1727_v25  ;;  %v679_v56 = vrot.slane %v1727_v25, 2  ;;  %v594_v60 = vrot.slane %v1727_v25, 1  ;;  %v1389_v23 = vpack.c.bf16 %v858_v21, %v857_v20 }
 0x2d0   :  { %v435_v31 = vrot.slane %v411_v28, 1  ;;  %414 = vst.msk [vmem:[#allocation5] sm:$0xf] %vm413_vm14, %v411_v28  ;;  %v678_v55 = vrot.slane %v411_v28, 3  ;;  %v593_v59 = vrot.slane %v411_v28, 2 }
 0x2d1   :  { %v511_v35 = vsel %vm436_vm15, %v510_v29, %v411_v28  ;;  %v1395_v28 = vpack.c.bf16 %v862_v27, %v861_v26 }
 0x2d2   :  { %1180 = vmatmul.mubr.msk.f32.vlgmr.msra.gmra.mrb[2].mxu1 %vm285_vm10, %v511_v35  ;;  %v437_v38 = vsel %vm436_vm15, %v1727_v25, %v435_v31  ;;  %v680_v62 = vsel %vm436_vm15, %v679_v56, %v678_v55  ;;  %v595_v1 = vsel %vm436_vm15, %v594_v60, %v593_v59  ;;  %v1392_v25 = vpack.c.bf16 %v860_v24, %v859_v22 }
 0x2d3   :  { %1354 = vmatpush3.bf16.msra.mxu1 %v1353_v30  ;;  %1161 = vmatmul.mubr.msk.f32.vlgmr.msra.gmra.mrb[4].mxu0 %vm285_vm10, %v437_v38 }
 0x2d4   :  { %1342 = vmatpush3.bf16.msra.mxu0 %v1341_v32  ;;  %1355 = vmatprep.subr.bf16.mxu1 %v1440_v51 }
 0x2d5   :  { %1343 = vmatprep.subr.bf16.mxu0 %v1440_v51  ;;  %1217 = vmatprep.mubr.msk.f32.mxu1 %vm1441_vm13, %v1437_v54 }
 0x2d6   :  { %1198 = vmatprep.mubr.msk.f32.mxu0 %vm1441_vm13, %v1437_v54 }
 0x2d7   :  { %1357 = vmatpush3.bf16.msra.mxu1 %v1356_v39  ;;  %v1003_v39 = vld [vmem:[%s1915_s6] ss:$0 sm:$0xff]  ;;  %s1442_s6 = smov [#allocation5]  }
 0x2d8   :  { %1345 = vmatpush3.bf16.msra.mxu0 %v1344_v40  ;;  %1358 = vmatprep.subr.bf16.mxu1 %v1440_v51  ;;  %s951_s23 = sshll.u32 %s1442_s6, 4  ;;  %s952_s23 = int_to_ptr.vmem [resolvable:$true] %s951_s23 }
 0x2d9   :  { %1346 = vmatprep.subr.bf16.mxu0 %v1440_v51  ;;  %s1410_s24 = scalar_lea.vmem %s952_s23, 128  ;;  %p1415_p1 = scmp.lt.s32.totalorder %s952_s23, %s952_s23 }
 0x2da   :  { %p1411_p0 = scmp.ne.s32.totalorder %s952_s23, %s1410_s24  ;;  %p1416_p2 = scmp.lt.s32.totalorder %s1410_s24, %s1410_s24 }
 0x2db   :  { %1360 = vmatpush3.bf16.msra.mxu1 %v1359_v45  ;;  %v1004_v45 = vld [vmem:[%s1917_s8] ss:$0 sm:$0xff] }
 0x2dc   :  { %1348 = vmatpush3.bf16.msra.mxu0 %v1347_v46  ;;  %1361 = vmatprep.subr.bf16.mxu1 %v1440_v51  ;;  %p1417_p3 = por %p1416_p2, %p1415_p1 }
 0x2dd   :  { %1349 = vmatprep.subr.bf16.mxu0 %v1440_v51 }
 0x2de   :  { %p1418_p4 = pnand %p1417_p3, %p1411_p0 }
 0x2df   :  { %1363 = vmatpush3.bf16.msra.mxu1 %v1362_v52 }
 0x2e0   :  { %1351 = vmatpush3.bf16.msra.mxu0 %v1350_v53  ;;  %1388 = vmatprep.subr.bf16.mxu1 %v1440_v51 }
 0x2e1   :  { %1364 = vmatprep.subr.bf16.mxu0 %v1440_v51 }
 0x2e2   :  { %1218 = vmatmul.mubr.msk.f32.vlgmr.msra.gmra.mrb[4].mxu1 %vm285_vm10, %v680_v62 }
 0x2e3   :  { %1199 = vmatmul.mubr.msk.f32.vlgmr.msra.gmra.mrb[6].mxu0 %vm285_vm10, %v595_v1  ;;  %1271 = vmatprep.mubr.msk.f32.mxu1 %vm1441_vm13, %v1437_v54 }
 0x2e4   :  { %1366 = vmatpush3.bf16.msra.mxu0 %v1365_v61  ;;  %1252 = vmatprep.mubr.msk.f32.mxu0 %vm1441_vm13, %v1437_v54  ;;  %v770_v54 = vld [vmem:[%s1916_s7 + $0x38] sm:$0xff] }
 0x2e5   :  { %1367 = vmatprep.subr.bf16.mxu0 %v1440_v51  ;;  %v1374_v7 = vpack.c.bf16 %v770_v54, %v769_v6  ;;  %1390 = vmatpush3.bf16.msra.mxu1 %v1389_v23 }
 0x2e6   :  { %1391 = vmatprep.subr.bf16.mxu1 %v1440_v51 }
 0x2e8   :  { %1369 = vmatpush3.bf16.msra.mxu0 %v1368_v2 }
 0x2e9   :  { %1370 = vmatprep.subr.bf16.mxu0 %v1440_v51  ;;  %1393 = vmatpush3.bf16.msra.mxu1 %v1392_v25 }
 0x2ea   :  { %1394 = vmatprep.subr.bf16.mxu1 %v1440_v51 }
 0x2ec   :  { %1372 = vmatpush3.bf16.msra.mxu0 %v1371_v5 }
 0x2ed   :  { %1373 = vmatprep.subr.bf16.mxu0 %v1440_v51  ;;  %1396 = vmatpush3.bf16.msra.mxu1 %v1395_v28 }
 0x2ee   :  { %1397 = vmatprep.subr.bf16.mxu1 %v1440_v51 }
 0x2f0   :  { %1375 = vmatpush3.bf16.msra.mxu0 %v1374_v7 }
 0x2f1   :  { %1376 = vmatprep.subr.bf16.mxu0 %v1440_v51 }
 0x2f4   :  { %1378 = vmatpush3.bf16.msra.mxu0 %v1377_v10 }
 0x2f5   :  { %1379 = vmatprep.subr.bf16.mxu0 %v1440_v51 }
 0x2f8   :  { %1381 = vmatpush3.bf16.msra.mxu0 %v1380_v13 }
 0x2f9   :  { %1382 = vmatprep.subr.bf16.mxu0 %v1440_v51 }
 0x2fc   :  { %1384 = vmatpush3.bf16.msra.mxu0 %v1383_v16 }
 0x2fd   :  { %1385 = vmatprep.subr.bf16.mxu0 %v1440_v51  ;;  %v863_v51 = vld [vmem:[%s1918_s9 + $0x30] sm:$0xff] }
 0x2fe   :  { %v1398_v44 = vpack.c.bf16 %v864_v43, %v863_v51 }
 0x300   :  { %1387 = vmatpush3.bf16.msra.mxu0 %v1386_v19  ;;  %1399 = vmatpush3.bf16.msra.mxu1 %v1398_v44 }
 0x3a5   :  { %v580_v29 = vpop.f32.mrb[2].mxu1 }
 0x3a6   :  { %v506_v30 = vpop.f32.mrb[4].mxu0  ;;  %v1181_v31 = vpop.f32.mrb[3].mxu1 }
 0x3a7   :  { %v581_v32 = vadd.f32 %v580_v29, %v506_v30  ;;  %v1162_v33 = vpop.f32.mrb[5].mxu0 }
 0x3b5   :  { %v749_v34 = vpop.f32.mrb[4].mxu1 }
 0x3b6   :  { %v664_v35 = vpop.f32.mrb[6].mxu0  ;;  %v1219_v36 = vpop.f32.mrb[5].mxu1 }
 0x3b7   :  { %v668_v37 = vadd.f32 %v664_v35, %v581_v32  ;;  %v1200_v38 = vpop.f32.mrb[7].mxu0 }
 0x3b9   :  { %v753_v40 = vadd.f32 %v749_v34, %v668_v37 }
 0x3bb   :  { %v761_v41 = vadd.f32 %v1003_v39, %v753_v40 }
 0x3bd   :  { %v762_v42 = vmax.f32 %v761_v41, 0.0 }
 0x3bf   :  { %1253 = vmatmul.mubr.f32.vlgmr.msra.gmra.mrb[8].mxu0 %v762_v42 }
 0x492   :  { %v852_v46 = vpop.f32.mrb[8].mxu0 }
 0x493   :  { %v853_v47 = vadd.f32 %v1004_v45, %v852_v46  ;;  %v1254_v48 = vpop.f32.mrb[9].mxu0 }
 0x495   :  { %v856_v49 = vmax.f32 %v853_v47, 0.0 }
 0x497   :  { %1272 = vmatmul.mubr.msk.f32.vlgmr.msra.gmra.mrb[6].mxu1 %vm285_vm10, %v856_v49 }
 0x498   :  { %1421 = shalt.err (!%p1418_p4)
}
 0x499   :  { %s1422_s8 = scalar_lea.hbm %s1920_s11, 128 }
 0x49a   :  { %p1423_p5 = scmp.ne.s32.totalorder %s1920_s11, %s1422_s8  ;;  %p1426_p6 = scmp.lt.u32.totalorder %s1422_s8, %s1920_s11 }
 0x49c   :  { %p1428_p7 = pnand %p1426_p6, %p1423_p5 }
 0x49e   :  { %1431 = shalt.err (!%p1428_p7)
}
 0x49f   :  { %s1443_s29 = smov 4   ;;  %v1005_v50 = vld [vmem:[%s1919_s10] ss:$0 sm:$0xff] }
 0x4a0   :  { %957 = dma.vmem_to_hbm [thread:$0]  %s952_s23, 128, %s1920_s11, [#allocation6], %s1439_s19, %s1439_s19, %s1443_s29  }
 0x56a   :  { %v941_v52 = vpop.f32.mrb[6].mxu1 }
 0x56b   :  { %v942_v53 = vadd.f32 %v1005_v50, %v941_v52  ;;  %v1273_v55 = vpop.f32.mrb[7].mxu1 }
 0x56d   :  { %945 = vst [vmem:[%s1921_s12] sm:$0x3] %v942_v53 }
 0x56e   :  { %1432 = dma.done.wait [#allocation6], 128  }
 0x56f   :  { %1433 = vsyncadd [#allocation6], 4294967168 }
 0x570   :  { %965 = vsyncpa [#allocation6], 1 }

</bundles_post_ra>
